<compile_context>
chip_gen: v5e
topology: v5e:2x2
jax: 0.10.0
libtpu: 0.0.40
codegen_flags: <defaults>
</compile_context>

<pallas_src>
import functools

import jax
import jax.numpy as jnp
from jax.experimental import pallas as pl
from jax.experimental.pallas import tpu as pltpu

EPS = 1e-6


# ---------------------------------------------------------------------------
# fused kernel: N x (x + Linear(LayerNorm(x)))  ->  final LayerNorm
# ---------------------------------------------------------------------------
def _encoder_kernel(x_ref, w_ref, b_ref, fa_ref, fb_ref, o_ref, *, n_layers):
    x = x_ref[...].astype(jnp.float32)                      # (T, H)
    h = x.shape[-1]
    inv_hm1 = 1.0 / (h - 1)

    def center_and_std(v):
        # PyTorch LayerNorm-module semantics: unbiased std, eps added outside sqrt.
        mean = jnp.mean(v, axis=-1, keepdims=True)
        c = v - mean
        var = jnp.sum(c * c, axis=-1, keepdims=True) * inv_hm1
        return c, jnp.sqrt(var)

    # Encoder layers (LN affine already folded into W'/b' on the host).
    for l in range(n_layers):
        c, std = center_and_std(x)
        inv = pl.reciprocal(std + EPS, approx=True)          # EUP slot, intermediate LN
        normed = (c * inv).astype(jnp.bfloat16)              # bf16 at the MXU boundary
        y = jnp.dot(normed, w_ref[l], preferred_element_type=jnp.float32)
        x = x + y + b_ref[l]                                 # residual, eval-mode dropout = id

    # Final Encoder LayerNorm: exact divide (no approximation on the model output).
    c, std = center_and_std(x)
    o_ref[...] = (fa_ref[...] * (c / (std + EPS)) + fb_ref[...]).astype(o_ref.dtype)


# ---------------------------------------------------------------------------
# VMEM budgeting / tiling helpers
# ---------------------------------------------------------------------------
def _vmem_budget_bytes():
    """~70% of the physical VMEM on this chip generation (v7x: 64 MiB, v5e/v6e: 128 MiB)."""
    try:
        cap = int(getattr(pltpu.get_tpu_info(), "vmem_capacity_bytes"))
    except Exception:
        cap = 64 << 20                       # assume the smallest (v7x) part if the query fails
    return (cap * 7) // 10


def _pick_rows_tile(rows, h, resident_bytes, budget):
    """Rows tile: multiple of 8, fits the VMEM budget including live f32 temporaries."""
    # f32 in + out tiles double-buffered (2*2) plus ~4 live f32 (T,H) temporaries in the body.
    per_row = (2 * 2 + 4) * h * 4
    cap = (budget - resident_bytes) // per_row
    cap = max(8, min(cap, 1024, max(rows, 8)))
    return int(max(8, (cap // 8) * 8))


# ---------------------------------------------------------------------------
# wrapper
# ---------------------------------------------------------------------------
def encoder_forward(x, mask, indices, layer_params, norm_a2, norm_b2, *, rows_tile=None):
    """Encoder.forward: [position] -> N x layer(x, mask) -> final LayerNorm.

    position is None in this instantiation (Encoder allows position=None).
    mask / indices feed the injected attention / positional-encoding modules,
    which are not part of the provided spec.
    """
    # TODO(synk): positional encoding and the attention-based EncoderLayer are injected
    #             modules not defined in the spec; each cloned layer is instantiated here
    #             as x + Linear(LayerNorm(x)) (mask unused, eval-mode dropout == identity).
    del mask, indices
    B, S, H = x.shape
    N = len(layer_params)
    rows = B * S

    # Fold LN affine into the sublayer Linear:
    #   (a2*(x-mean)*inv + b2) @ W + wb == ((x-mean)*inv) @ (diag(a2) @ W) + (b2 @ W + wb)
    w_stack = jnp.stack([(a2[:, None] * w).astype(jnp.bfloat16)
                         for (a2, b2, w, wb) in layer_params])             # (N, H, H) bf16
    b_stack = jnp.stack([(b2 @ w + wb).astype(jnp.float32)[None, :]
                         for (a2, b2, w, wb) in layer_params])             # (N, 1, H) f32
    fa = norm_a2.reshape(1, H).astype(jnp.float32)
    fb = norm_b2.reshape(1, H).astype(jnp.float32)

    # Grid-invariant weight blocks; count them worst-case double-buffered.
    resident = 2 * (w_stack.size * 2 + b_stack.size * 4 + 2 * H * 4)
    budget = _vmem_budget_bytes()
    if rows_tile is None:
        rows_tile = _pick_rows_tile(rows, H, resident, budget)

    # Pad rows to a multiple of rows_tile (pl.cdiv grid); padded garbage rows sliced off below.
    x2d = x.reshape(rows, H).astype(jnp.float32)
    grid_m = pl.cdiv(rows, rows_tile)
    rows_pad = grid_m * rows_tile
    if rows_pad != rows:
        x2d = jnp.pad(x2d, ((0, rows_pad - rows), (0, 0)))

    need = (2 * 2 + 4) * rows_tile * H * 4 + resident
    cp_kwargs = dict(dimension_semantics=("parallel",))
    if need > (32 << 20):            # only override the scoped default when required
        cp_kwargs["vmem_limit_bytes"] = int(min(need, budget))

    cost = pl.CostEstimate(
        flops=int(N * 2 * rows * H * H + (N + 1) * 8 * rows * H),
        transcendentals=int((N + 1) * 2 * rows),
        bytes_accessed=int(2 * rows * H * 4 + N * H * H * 2 + (N + 3) * H * 4),
    )

    out = pl.pallas_call(
        functools.partial(_encoder_kernel, n_layers=N),
        out_shape=jax.ShapeDtypeStruct((rows_pad, H), x.dtype),
        grid_spec=pltpu.PrefetchScalarGridSpec(
            num_scalar_prefetch=0,
            grid=(grid_m,),
            in_specs=[
                pl.BlockSpec((rows_tile, H), lambda i: (i, 0)),    # activation rows
                pl.BlockSpec((N, H, H), lambda i: (0, 0, 0)),      # stacked W' (grid-invariant)
                pl.BlockSpec((N, 1, H), lambda i: (0, 0, 0)),      # stacked b'
                pl.BlockSpec((1, H), lambda i: (0, 0)),            # final LN gain
                pl.BlockSpec((1, H), lambda i: (0, 0)),            # final LN bias
            ],
            out_specs=pl.BlockSpec((rows_tile, H), lambda i: (i, 0)),
        ),
        compiler_params=pltpu.CompilerParams(**cp_kwargs),
        cost_estimate=cost,
    )(x2d, w_stack, b_stack, fa, fb)

    return out[:rows].reshape(B, S, H)


# ---------------------------------------------------------------------------
# pure-JAX reference (faithful PyTorch math, f32 matmuls)
# ---------------------------------------------------------------------------
def _reference(x, layer_params, norm_a2, norm_b2):
    def ln(v, a, b):
        h = v.shape[-1]
        mean = jnp.mean(v, axis=-1, keepdims=True)
        c = v - mean
        std = jnp.sqrt(jnp.sum(c * c, axis=-1, keepdims=True) / (h - 1))
        return a * c / (std + EPS) + b

    for (a2, b2, w, wb) in layer_params:
        x = x + (ln(x, a2, b2) @ w + wb)
    return ln(x, norm_a2, norm_b2)


if __name__ == "__main__":
    key = jax.random.PRNGKey(0)
    # batch=2, slate_length=8, hidden=128 (lane-dense, multiple of 128), N=2 layers.
    B, S, H, N = 2, 8, 128, 2

    keys = jax.random.split(key, 2 * N + 1)
    x = jax.random.normal(keys[0], (B, S, H), dtype=jnp.float32)
    mask = jnp.ones((B, S), dtype=jnp.bool_)                       # all items valid
    indices = jnp.tile(jnp.arange(S, dtype=jnp.int32)[None, :], (B, 1))

    layer_params = []
    for n in range(N):
        kw, kb = keys[1 + 2 * n], keys[2 + 2 * n]
        a2 = jnp.ones((H,), dtype=jnp.float32)      # LayerNorm params at init values
        b2 = jnp.zeros((H,), dtype=jnp.float32)
        w = jax.random.normal(kw, (H, H), dtype=jnp.float32) * 0.05
        wb = jax.random.normal(kb, (H,), dtype=jnp.float32) * 0.05
        layer_params.append((a2, b2, w, wb))
    norm_a2 = jnp.ones((H,), dtype=jnp.float32)
    norm_b2 = jnp.zeros((H,), dtype=jnp.float32)

    out = encoder_forward(x, mask, indices, layer_params, norm_a2, norm_b2)
    out = jax.block_until_ready(out)

    ref = _reference(x, layer_params, norm_a2, norm_b2)
    assert out.shape == (B, S, H)
    # Tolerance covers bf16 MXU operands and the approx reciprocal in intermediate LNs.
    assert jnp.allclose(out, ref, atol=5e-2, rtol=5e-2), "mismatch vs reference"

    print("KERNEL_OK")
</pallas_src>

<mosaic_0001>
module attributes {stable_mosaic.version = 11 : i64} {
  func.func @_encoder_kernel(%arg0: i32, %arg1: memref<16x128xf32, #tpu.memory_space<vmem>>, %arg2: memref<2x128x128xbf16, #tpu.memory_space<vmem>>, %arg3: memref<2x1x128xf32, #tpu.memory_space<vmem>>, %arg4: memref<1x128xf32, #tpu.memory_space<vmem>>, %arg5: memref<1x128xf32, #tpu.memory_space<vmem>>, %arg6: memref<16x128xf32, #tpu.memory_space<vmem>>) attributes {dimension_semantics = [#tpu.dimension_semantics<parallel>], iteration_bounds = array<i64: 1>, scalar_prefetch = 0 : i64, scratch_operands = 0 : i64, tpu.core_type = #tpu.core_type<tc>, window_params = [{transform_indices = @transform_0, window_bounds = array<i64: 16, 128>}, {pipeline_mode = #tpu.pipeline_mode<synchronous>, transform_indices = @transform_1, window_bounds = array<i64: 2, 128, 128>}, {pipeline_mode = #tpu.pipeline_mode<synchronous>, transform_indices = @transform_2, window_bounds = array<i64: 2, 1, 128>}, {pipeline_mode = #tpu.pipeline_mode<synchronous>, transform_indices = @transform_3, window_bounds = array<i64: 1, 128>}, {pipeline_mode = #tpu.pipeline_mode<synchronous>, transform_indices = @transform_4, window_bounds = array<i64: 1, 128>}, {transform_indices = @transform_5, window_bounds = array<i64: 16, 128>}]} {
    %c0 = arith.constant 0 : index
    %c0_0 = arith.constant 0 : index
    %0 = vector.load %arg1[%c0, %c0_0] : memref<16x128xf32, #tpu.memory_space<vmem>>, vector<16x128xf32>
    %cst = arith.constant dense<0.000000e+00> : vector<16xf32>
    %1 = vector.multi_reduction <add>, %0, %cst [1] : vector<16x128xf32> to vector<16xf32>
    %2 = vector.shape_cast %1 : vector<16xf32> to vector<16x1xf32>
    %cst_1 = arith.constant 1.280000e+02 : f32
    %3 = vector.broadcast %cst_1 : f32 to vector<16x1xf32>
    %4 = arith.divf %2, %3 : vector<16x1xf32>
    %5 = vector.broadcast %4 : vector<16x1xf32> to vector<16x128xf32>
    %6 = arith.subf %0, %5 : vector<16x128xf32>
    %7 = arith.mulf %6, %6 : vector<16x128xf32>
    %cst_2 = arith.constant dense<0.000000e+00> : vector<16xf32>
    %8 = vector.multi_reduction <add>, %7, %cst_2 [1] : vector<16x128xf32> to vector<16xf32>
    %9 = vector.shape_cast %8 : vector<16xf32> to vector<16x1xf32>
    %cst_3 = arith.constant 0.00787401571 : f32
    %10 = vector.broadcast %cst_3 : f32 to vector<16x1xf32>
    %11 = arith.mulf %9, %10 : vector<16x1xf32>
    %12 = math.sqrt %11 : vector<16x1xf32>
    %cst_4 = arith.constant 9.99999997E-7 : f32
    %13 = vector.broadcast %cst_4 : f32 to vector<16x1xf32>
    %14 = arith.addf %12, %13 : vector<16x1xf32>
    %15 = tpu.reciprocal %14 {approx = true} : vector<16x1xf32> -> vector<16x1xf32>
    %16 = vector.broadcast %15 : vector<16x1xf32> to vector<16x128xf32>
    %17 = arith.mulf %6, %16 : vector<16x128xf32>
    %18 = arith.truncf %17 : vector<16x128xf32> to vector<16x128xbf16>
    %c0_5 = arith.constant 0 : index
    %c0_6 = arith.constant 0 : index
    %c0_7 = arith.constant 0 : index
    %19 = vector.load %arg2[%c0_5, %c0_6, %c0_7] : memref<2x128x128xbf16, #tpu.memory_space<vmem>>, vector<1x128x128xbf16>
    %20 = vector.shape_cast %19 : vector<1x128x128xbf16> to vector<128x128xbf16>
    %cst_8 = arith.constant dense<0.000000e+00> : vector<16x128xf32>
    %21 = tpu.matmul %18, %20, %cst_8 {dimension_numbers = #tpu.dot_dimension_numbers<[1], [0], [0], [1], [0, 0, 1, 1], [], []>} : vector<16x128xbf16>, vector<128x128xbf16>, vector<16x128xf32> -> vector<16x128xf32>
    %22 = arith.addf %0, %21 : vector<16x128xf32>
    %c0_9 = arith.constant 0 : index
    %c0_10 = arith.constant 0 : index
    %c0_11 = arith.constant 0 : index
    %23 = vector.load %arg3[%c0_9, %c0_10, %c0_11] : memref<2x1x128xf32, #tpu.memory_space<vmem>>, vector<1x1x128xf32>
    %24 = vector.shape_cast %23 : vector<1x1x128xf32> to vector<1x128xf32>
    %25 = vector.broadcast %24 : vector<1x128xf32> to vector<16x128xf32>
    %26 = arith.addf %22, %25 : vector<16x128xf32>
    %cst_12 = arith.constant dense<0.000000e+00> : vector<16xf32>
    %27 = vector.multi_reduction <add>, %26, %cst_12 [1] : vector<16x128xf32> to vector<16xf32>
    %28 = vector.shape_cast %27 : vector<16xf32> to vector<16x1xf32>
    %cst_13 = arith.constant 1.280000e+02 : f32
    %29 = vector.broadcast %cst_13 : f32 to vector<16x1xf32>
    %30 = arith.divf %28, %29 : vector<16x1xf32>
    %31 = vector.broadcast %30 : vector<16x1xf32> to vector<16x128xf32>
    %32 = arith.subf %26, %31 : vector<16x128xf32>
    %33 = arith.mulf %32, %32 : vector<16x128xf32>
    %cst_14 = arith.constant dense<0.000000e+00> : vector<16xf32>
    %34 = vector.multi_reduction <add>, %33, %cst_14 [1] : vector<16x128xf32> to vector<16xf32>
    %35 = vector.shape_cast %34 : vector<16xf32> to vector<16x1xf32>
    %cst_15 = arith.constant 0.00787401571 : f32
    %36 = vector.broadcast %cst_15 : f32 to vector<16x1xf32>
    %37 = arith.mulf %35, %36 : vector<16x1xf32>
    %38 = math.sqrt %37 : vector<16x1xf32>
    %cst_16 = arith.constant 9.99999997E-7 : f32
    %39 = vector.broadcast %cst_16 : f32 to vector<16x1xf32>
    %40 = arith.addf %38, %39 : vector<16x1xf32>
    %41 = tpu.reciprocal %40 {approx = true} : vector<16x1xf32> -> vector<16x1xf32>
    %42 = vector.broadcast %41 : vector<16x1xf32> to vector<16x128xf32>
    %43 = arith.mulf %32, %42 : vector<16x128xf32>
    %44 = arith.truncf %43 : vector<16x128xf32> to vector<16x128xbf16>
    %c1 = arith.constant 1 : index
    %c0_17 = arith.constant 0 : index
    %c0_18 = arith.constant 0 : index
    %45 = vector.load %arg2[%c1, %c0_17, %c0_18] : memref<2x128x128xbf16, #tpu.memory_space<vmem>>, vector<1x128x128xbf16>
    %46 = vector.shape_cast %45 : vector<1x128x128xbf16> to vector<128x128xbf16>
    %cst_19 = arith.constant dense<0.000000e+00> : vector<16x128xf32>
    %47 = tpu.matmul %44, %46, %cst_19 {dimension_numbers = #tpu.dot_dimension_numbers<[1], [0], [0], [1], [0, 0, 1, 1], [], []>} : vector<16x128xbf16>, vector<128x128xbf16>, vector<16x128xf32> -> vector<16x128xf32>
    %48 = arith.addf %26, %47 : vector<16x128xf32>
    %c1_20 = arith.constant 1 : index
    %c0_21 = arith.constant 0 : index
    %c0_22 = arith.constant 0 : index
    %49 = vector.load %arg3[%c1_20, %c0_21, %c0_22] : memref<2x1x128xf32, #tpu.memory_space<vmem>>, vector<1x1x128xf32>
    %50 = vector.shape_cast %49 : vector<1x1x128xf32> to vector<1x128xf32>
    %51 = vector.broadcast %50 : vector<1x128xf32> to vector<16x128xf32>
    %52 = arith.addf %48, %51 : vector<16x128xf32>
    %cst_23 = arith.constant dense<0.000000e+00> : vector<16xf32>
    %53 = vector.multi_reduction <add>, %52, %cst_23 [1] : vector<16x128xf32> to vector<16xf32>
    %54 = vector.shape_cast %53 : vector<16xf32> to vector<16x1xf32>
    %cst_24 = arith.constant 1.280000e+02 : f32
    %55 = vector.broadcast %cst_24 : f32 to vector<16x1xf32>
    %56 = arith.divf %54, %55 : vector<16x1xf32>
    %57 = vector.broadcast %56 : vector<16x1xf32> to vector<16x128xf32>
    %58 = arith.subf %52, %57 : vector<16x128xf32>
    %59 = arith.mulf %58, %58 : vector<16x128xf32>
    %cst_25 = arith.constant dense<0.000000e+00> : vector<16xf32>
    %60 = vector.multi_reduction <add>, %59, %cst_25 [1] : vector<16x128xf32> to vector<16xf32>
    %61 = vector.shape_cast %60 : vector<16xf32> to vector<16x1xf32>
    %cst_26 = arith.constant 0.00787401571 : f32
    %62 = vector.broadcast %cst_26 : f32 to vector<16x1xf32>
    %63 = arith.mulf %61, %62 : vector<16x1xf32>
    %64 = math.sqrt %63 : vector<16x1xf32>
    %c0_27 = arith.constant 0 : index
    %c0_28 = arith.constant 0 : index
    %65 = vector.load %arg4[%c0_27, %c0_28] : memref<1x128xf32, #tpu.memory_space<vmem>>, vector<1x128xf32>
    %cst_29 = arith.constant 9.99999997E-7 : f32
    %66 = vector.broadcast %cst_29 : f32 to vector<16x1xf32>
    %67 = arith.addf %64, %66 : vector<16x1xf32>
    %68 = vector.broadcast %67 : vector<16x1xf32> to vector<16x128xf32>
    %69 = arith.divf %58, %68 : vector<16x128xf32>
    %70 = vector.broadcast %65 : vector<1x128xf32> to vector<16x128xf32>
    %71 = arith.mulf %70, %69 : vector<16x128xf32>
    %c0_30 = arith.constant 0 : index
    %c0_31 = arith.constant 0 : index
    %72 = vector.load %arg5[%c0_30, %c0_31] : memref<1x128xf32, #tpu.memory_space<vmem>>, vector<1x128xf32>
    %73 = vector.broadcast %72 : vector<1x128xf32> to vector<16x128xf32>
    %74 = arith.addf %71, %73 : vector<16x128xf32>
    %c0_32 = arith.constant 0 : index
    %c0_33 = arith.constant 0 : index
    %75 = vector.load %arg6[%c0_32, %c0_33] : memref<16x128xf32, #tpu.memory_space<vmem>>, vector<16x128xf32>
    tpu.vector_store %arg6[%c0_32, %c0_33], %74 {strides = array<i32>} : memref<16x128xf32, #tpu.memory_space<vmem>>, vector<16x128xf32>,
    return
  }
  func.func @transform_0(%arg0: i32) -> (i32, i32) {
    %c0_i32 = arith.constant 0 : i32
    %c0_i32_0 = arith.constant 0 : i32
    return %arg0, %c0_i32 : i32, i32
  }
  func.func @transform_1(%arg0: i32) -> (i32, i32, i32) {
    %c0_i32 = arith.constant 0 : i32
    %c0_i32_0 = arith.constant 0 : i32
    %c0_i32_1 = arith.constant 0 : i32
    %c0_i32_2 = arith.constant 0 : i32
    return %c0_i32, %c0_i32_0, %c0_i32_1 : i32, i32, i32
  }
  func.func @transform_2(%arg0: i32) -> (i32, i32, i32) {
    %c0_i32 = arith.constant 0 : i32
    %c0_i32_0 = arith.constant 0 : i32
    %c0_i32_1 = arith.constant 0 : i32
    %c0_i32_2 = arith.constant 0 : i32
    return %c0_i32, %c0_i32_0, %c0_i32_1 : i32, i32, i32
  }
  func.func @transform_3(%arg0: i32) -> (i32, i32) {
    %c0_i32 = arith.constant 0 : i32
    %c0_i32_0 = arith.constant 0 : i32
    %c0_i32_1 = arith.constant 0 : i32
    return %c0_i32, %c0_i32_0 : i32, i32
  }
  func.func @transform_4(%arg0: i32) -> (i32, i32) {
    %c0_i32 = arith.constant 0 : i32
    %c0_i32_0 = arith.constant 0 : i32
    %c0_i32_1 = arith.constant 0 : i32
    return %c0_i32, %c0_i32_0 : i32, i32
  }
  func.func @transform_5(%arg0: i32) -> (i32, i32) {
    %c0_i32 = arith.constant 0 : i32
    %c0_i32_0 = arith.constant 0 : i32
    return %arg0, %c0_i32 : i32, i32
  }
}

</mosaic_0001>

<bundles_post_ra>
// kernel: tpu_custom_call.1
= control target key start
LH: loop header
LB: loop body
LE: loop exit
PB: predicated region body
PF: predicated region fallthrough
CT: control target
= control target key end

     0   :  { %10 = vsyncpa [#allocation3], 0  ;;  %s772_s0 = inlined_call_operand.hbm [shape: f32[16,128], index: 0, kind: input, shape index: {}]   ;;  %s773_s1 = inlined_call_operand.hbm [shape: bf16[2,128,128], index: 1, kind: input, shape index: {}]   ;;  %s774_s2 = inlined_call_operand.hbm [shape: f32[2,1,128], index: 2, kind: input, shape index: {}]   ;;  %s775_s3 = inlined_call_operand.vmem [shape: f32[1,128], index: 3, kind: input, shape index: {}]   ;;  %s776_s4 = inlined_call_operand.vmem [shape: f32[1,128], index: 4, kind: input, shape index: {}]   ;;  %s777_s5 = inlined_call_operand.hbm [shape: f32[16,128], index: 5, kind: output, shape index: {}]  }
   0x1   :  { %11 = vsyncpa [#allocation6], 0  ;;  %s30_s20 = sshll.u32 %s773_s1, 4  ;;  %s31_s20 = int_to_ptr.hbm [resolvable:$true] %s30_s20 }
   0x2   :  { %12 = vsyncpa [#allocation4], 0  ;;  %s674_s21 = smov [#allocation5]   ;;  %s17_s25 = sshll.u32 %s772_s0, 4  ;;  %s18_s25 = int_to_ptr.hbm [resolvable:$true] %s17_s25 }
   0x3   :  { %s32_s22 = sshll.u32 %s674_s21, 4  ;;  %s675_s26 = smov 64   ;;  %s33_s22 = int_to_ptr.vmem [resolvable:$true] %s32_s22 }
   0x4   :  { %s676_s27 = smov 4   ;;  %s677_s28 = smov [#allocation2]  }
   0x5   :  { %38 = dma.hbm_to_vmem [thread:$0]  %s31_s20, 2048, %s33_s22, [#allocation6], %s675_s26, %s675_s26, %s676_s27  }
   0x6   :  { %s19_s29 = sshll.u32 %s677_s28, 4  ;;  %s678_s30 = smov 128   ;;  %s20_s29 = int_to_ptr.vmem [resolvable:$true] %s19_s29 }
   0x7   :  { %s679_s6 = smov 8   ;;  %s43_s8 = sshll.u32 %s774_s2, 4  ;;  %s44_s8 = int_to_ptr.hbm [resolvable:$true] %s43_s8 }
   0x8   :  { %25 = dma.hbm_to_vmem [thread:$0]  %s18_s25, 256, %s20_s29, [#allocation3], %s678_s30, %s678_s30, %s679_s6  }
   0x9   :  { %s680_s9 = smov [#allocation7]   ;;  %s681_s10 = smov 16  }
   0xa   :  { %s45_s0 = sshll.u32 %s680_s9, 4  ;;  %s682_s11 = smov 1   ;;  %s46_s0 = int_to_ptr.vmem [resolvable:$true] %s45_s0 }
   0xb   :  { %51 = dma.hbm_to_vmem [thread:$0]  %s44_s8, 32, %s46_s0, [#allocation6], %s681_s10, %s681_s10, %s682_s11  }
   0xc   :  { %668 = dma.done.wait [#allocation3], 256  }
   0xd   :  { %669 = vsyncadd [#allocation3], 4294967040 }
   0xe   :  { %670 = dma.done.wait [#allocation6], 2080  }
   0xf   :  { %671 = vsyncadd [#allocation6], 4294965216  ;;  %v727_v0 = vld [vmem:[#allocation2] sm:$0xff]  ;;  %v730_v1 = vld [vmem:[#allocation2 + $0x8] sm:$0xff]  ;;  %v683_v2 = vmov 128.0   ;;  %s437_s17 = sshll.u32 %s777_s5, 4  ;;  %s438_s17 = int_to_ptr.hbm [resolvable:$true] %s437_s17 }
  0x10   :  { %70 = vadd.xlane.f32.xlu0 %v727_v0  ;;  %546 = vrcp.f32 %v683_v2  ;;  %v522_v17 = vld [vmem:[#allocation5 + $0x38] sm:$0xff]  ;;  %v521_v18 = vld [vmem:[#allocation5 + $0x30] sm:$0xff]  ;;  %v520_v19 = vld [vmem:[#allocation5 + $0x28] sm:$0xff] }
  0x11   :  { %188 = vmatpush.bf16.msra.mxu0 %v522_v17  ;;  %v519_v20 = vld [vmem:[#allocation5 + $0x20] sm:$0xff]  ;;  %v518_v21 = vld [vmem:[#allocation5 + $0x18] sm:$0xff]  ;;  %v517_v22 = vld [vmem:[#allocation5 + $0x10] sm:$0xff] }
  0x12   :  { %v516_v25 = vld [vmem:[#allocation5 + $0x8] sm:$0xff]  ;;  %v515_v26 = vld [vmem:[#allocation5] sm:$0xff] }
  0x13   :  { %v542_v56 = vld [vmem:[#allocation7] ss:$0 sm:$0xff] }
  0x14   :  { %v523_v17 = vld [vmem:[#allocation5 + $0x40] sm:$0xff] }
  0x15   :  { %189 = vmatpush.bf16.msra.mxu0 %v521_v18 }
  0x16   :  { %v547_v3 = vpop.eup %546 }
  0x17   :  { %v75_v4 = vmul.f32 128.0, %v547_v3  ;;  %vm79_vm0 = vweird.f32 %v547_v3 }
  0x18   :  { %72 = vadd.xlane.f32.xlu0 %v730_v1 }
  0x19   :  { %v76_v5 = vsub.f32 1.0, %v75_v4  ;;  %190 = vmatpush.bf16.msra.mxu0 %v520_v19 }
  0x1b   :  { %v77_v6 = vmul.f32 %v547_v3, %v76_v5 }
  0x1d   :  { %v78_v7 = vadd.f32 %v547_v3, %v77_v6  ;;  %191 = vmatpush.bf16.msra.mxu0 %v519_v20 }
  0x1f   :  { %v733_v8 = vsel %vm79_vm0, %v547_v3, %v78_v7 }
  0x21   :  { %192 = vmatpush.bf16.msra.mxu0 %v518_v21 }
  0x25   :  { %193 = vmatpush.bf16.msra.mxu0 %v517_v22 }
  0x29   :  { %194 = vmatpush.bf16.msra.mxu0 %v516_v25 }
  0x2d   :  { %195 = vmatpush.bf16.msra.mxu0 %v515_v26 }
  0x83   :  { %v71_v9 = vpop.xlane.xlu0 %70 }
  0x84   :  { %v81_v10 = vmul.f32 %v733_v8, %v71_v9  ;;  %v530_v9 = vld [vmem:[#allocation5 + $0x78] sm:$0xff] }
  0x85   :  { %322 = vmatpush.bf16.msra.mxu1 %v530_v9 }
  0x86   :  { %v83_v11 = vsub.f32 %v727_v0, %v81_v10  ;;  %v528_v10 = vld [vmem:[#allocation5 + $0x68] sm:$0xff] }
  0x88   :  { %v85_v12 = vmul.f32 %v83_v11, %v83_v11 }
  0x8a   :  { %87 = vadd.xlane.f32.xlu1 %v85_v12  ;;  %v526_v12 = vld [vmem:[#allocation5 + $0x58] sm:$0xff] }
  0x8b   :  { %v73_v13 = vpop.xlane.xlu0 %72 }
  0x8c   :  { %v82_v14 = vmul.f32 %v733_v8, %v73_v13  ;;  %v525_v13 = vld [vmem:[#allocation5 + $0x50] sm:$0xff] }
  0x8e   :  { %v84_v15 = vsub.f32 %v730_v1, %v82_v14 }
  0x90   :  { %v86_v16 = vmul.f32 %v84_v15, %v84_v15 }
  0x92   :  { %89 = vadd.xlane.f32.xlu1 %v86_v16  ;;  %v524_v16 = vld [vmem:[#allocation5 + $0x48] sm:$0xff] }
  0xfd   :  { %v88_v23 = vpop.xlane.xlu1 %87 }
  0xfe   :  { %v91_v24 = vmul.f32 0.007874016, %v88_v23 }
 0x100   :  { %548 = vrsqrt.f32 %v91_v24  ;;  %vm100_vm1 = vcmp.eq.f32.partialorder %v91_v24, inf  ;;  %v103_v41 = vand.u32 2147483648, %v91_v24  ;;  %vm102_vm2 = vcmp.eq.f32.partialorder %v91_v24, 0.0 }
 0x105   :  { %v90_v27 = vpop.xlane.xlu1 %89 }
 0x106   :  { %v549_v28 = vpop.eup %548  ;;  %v92_v29 = vmul.f32 0.007874016, %v90_v27 }
 0x107   :  { %v94_v30 = vmul.f32 %v549_v28, %v91_v24 }
 0x108   :  { %550 = vrsqrt.f32 %v92_v29  ;;  %vm112_vm3 = vcmp.eq.f32.partialorder %v92_v29, inf  ;;  %v115_v47 = vand.u32 2147483648, %v92_v29  ;;  %vm114_vm4 = vcmp.eq.f32.partialorder %v92_v29, 0.0 }
 0x109   :  { %v95_v31 = vmul.f32 %v549_v28, %v94_v30 }
 0x10b   :  { %v96_v32 = vmul.f32 0.5, %v95_v31 }
 0x10d   :  { %v97_v33 = vsub.f32 1.5, %v96_v32 }
 0x10e   :  { %v551_v34 = vpop.eup %550 }
 0x10f   :  { %v98_v35 = vmul.f32 %v549_v28, %v97_v33  ;;  %v106_v36 = vmul.f32 %v551_v34, %v92_v29 }
 0x111   :  { %v99_v37 = vmul.f32 %v98_v35, %v91_v24  ;;  %v107_v38 = vmul.f32 %v551_v34, %v106_v36 }
 0x113   :  { %v101_v39 = vsel %vm100_vm1, %v91_v24, %v99_v37  ;;  %v108_v40 = vmul.f32 0.5, %v107_v38 }
 0x114   :  { %v104_v43 = vsel %vm102_vm2, %v103_v41, %v101_v39 }
 0x115   :  { %v109_v42 = vsub.f32 1.5, %v108_v40  ;;  %v117_v46 = vadd.f32 1e-06, %v104_v43 }
 0x117   :  { %v110_v44 = vmul.f32 %v551_v34, %v109_v42  ;;  %552 = vrcp.f32 %v117_v46 }
 0x119   :  { %v111_v45 = vmul.f32 %v110_v44, %v92_v29 }
 0x11b   :  { %v113_v48 = vsel %vm112_vm3, %v92_v29, %v111_v45 }
 0x11c   :  { %v116_v49 = vsel %vm114_vm4, %v115_v47, %v113_v48  ;;  %v543_v47 = vld [vmem:[#allocation7 + $0x1] ss:$0 sm:$0xff] }
 0x11d   :  { %v118_v50 = vadd.f32 1e-06, %v116_v49  ;;  %v553_v51 = vpop.eup %552 }
 0x11e   :  { %v121_v53 = vmul.f32 %v553_v51, %v83_v11  ;;  %v527_v11 = vld [vmem:[#allocation5 + $0x60] sm:$0xff] }
 0x11f   :  { %554 = vrcp.f32 %v118_v50 }
 0x125   :  { %v555_v52 = vpop.eup %554 }
 0x126   :  { %v122_v54 = vmul.f32 %v555_v52, %v84_v15 }
 0x128   :  { %v123_v55 = vpack.c.bf16 %v122_v54, %v121_v53 }
 0x12a   :  { %196 = vmatmul.bf16.vlgmr.msra.gmra.mxu0 %v123_v55 }
 0x1a7   :  { %v197_v57 = vpop.f32.mrf.mxu0 }
 0x1a8   :  { %v202_v58 = vadd.f32 %v197_v57, %v727_v0 }
 0x1aa   :  { %v740_v59 = vadd.f32 %v542_v56, %v202_v58 }
 0x1ac   :  { %210 = vadd.xlane.f32.xlu2 %v740_v59 }
 0x1af   :  { %v199_v60 = vpop.f32.mrf.mxu0 }
 0x1b0   :  { %v203_v61 = vadd.f32 %v199_v60, %v730_v1  ;;  %v529_v1 = vld [vmem:[#allocation5 + $0x70] sm:$0xff] }
 0x1b1   :  { %323 = vmatpush.bf16.msra.mxu1 %v529_v1 }
 0x1b2   :  { %v744_v62 = vadd.f32 %v542_v56, %v203_v61 }
 0x1b4   :  { %212 = vadd.xlane.f32.xlu2 %v744_v62 }
 0x1b5   :  { %324 = vmatpush.bf16.msra.mxu1 %v528_v10 }
 0x1b9   :  { %325 = vmatpush.bf16.msra.mxu1 %v527_v11 }
 0x1bd   :  { %326 = vmatpush.bf16.msra.mxu1 %v526_v12 }
 0x1c1   :  { %327 = vmatpush.bf16.msra.mxu1 %v525_v13 }
 0x1c5   :  { %328 = vmatpush.bf16.msra.mxu1 %v524_v16 }
 0x1c9   :  { %329 = vmatpush.bf16.msra.mxu1 %v523_v17 }
 0x21f   :  { %v211_v63 = vpop.xlane.xlu2 %210 }
 0x220   :  { %v214_v2 = vmul.f32 %v211_v63, %v733_v8 }
 0x222   :  { %v216_v3 = vsub.f32 %v740_v59, %v214_v2 }
 0x224   :  { %v218_v4 = vmul.f32 %v216_v3, %v216_v3 }
 0x226   :  { %220 = vadd.xlane.f32.xlu0 %v218_v4 }
 0x227   :  { %v213_v5 = vpop.xlane.xlu2 %212 }
 0x228   :  { %v215_v0 = vmul.f32 %v213_v5, %v733_v8 }
 0x22a   :  { %v217_v6 = vsub.f32 %v744_v62, %v215_v0 }
 0x22c   :  { %v219_v7 = vmul.f32 %v217_v6, %v217_v6 }
 0x22e   :  { %222 = vadd.xlane.f32.xlu1 %v219_v7 }
 0x299   :  { %v221_v14 = vpop.xlane.xlu0 %220 }
 0x29a   :  { %v224_v15 = vmul.f32 0.007874016, %v221_v14 }
 0x29c   :  { %556 = vrsqrt.f32 %v224_v15  ;;  %vm233_vm5 = vcmp.eq.f32.partialorder %v224_v15, inf  ;;  %v236_v32 = vand.u32 2147483648, %v224_v15  ;;  %vm235_vm6 = vcmp.eq.f32.partialorder %v224_v15, 0.0 }
 0x2a1   :  { %v223_v18 = vpop.xlane.xlu1 %222 }
 0x2a2   :  { %v557_v19 = vpop.eup %556  ;;  %v225_v20 = vmul.f32 0.007874016, %v223_v18 }
 0x2a3   :  { %v227_v21 = vmul.f32 %v557_v19, %v224_v15 }
 0x2a4   :  { %558 = vrsqrt.f32 %v225_v20  ;;  %vm245_vm7 = vcmp.eq.f32.partialorder %v225_v20, inf  ;;  %v248_v38 = vand.u32 2147483648, %v225_v20  ;;  %vm247_vm8 = vcmp.eq.f32.partialorder %v225_v20, 0.0 }
 0x2a5   :  { %v228_v22 = vmul.f32 %v557_v19, %v227_v21 }
 0x2a7   :  { %v229_v23 = vmul.f32 0.5, %v228_v22 }
 0x2a9   :  { %v230_v24 = vsub.f32 1.5, %v229_v23 }
 0x2aa   :  { %v559_v25 = vpop.eup %558 }
 0x2ab   :  { %v231_v26 = vmul.f32 %v557_v19, %v230_v24  ;;  %v239_v27 = vmul.f32 %v559_v25, %v225_v20 }
 0x2ad   :  { %v232_v28 = vmul.f32 %v231_v26, %v224_v15  ;;  %v240_v29 = vmul.f32 %v559_v25, %v239_v27 }
 0x2af   :  { %v234_v30 = vsel %vm233_vm5, %v224_v15, %v232_v28  ;;  %v241_v31 = vmul.f32 0.5, %v240_v29 }
 0x2b0   :  { %v237_v34 = vsel %vm235_vm6, %v236_v32, %v234_v30 }
 0x2b1   :  { %v242_v33 = vsub.f32 1.5, %v241_v31  ;;  %v250_v37 = vadd.f32 1e-06, %v237_v34 }
 0x2b3   :  { %v243_v35 = vmul.f32 %v559_v25, %v242_v33  ;;  %560 = vrcp.f32 %v250_v37 }
 0x2b5   :  { %v244_v36 = vmul.f32 %v243_v35, %v225_v20  ;;  %v544_v35 = vld [vmem:[%s775_s3] ss:$0 sm:$0xff]  ;;  %s684_s3 = smov [#allocation8]  }
 0x2b6   :  { %s435_s15 = sshll.u32 %s684_s3, 4  ;;  %s436_s15 = int_to_ptr.vmem [resolvable:$true] %s435_s15 }
 0x2b7   :  { %v246_v39 = vsel %vm245_vm7, %v225_v20, %v244_v36 }
 0x2b8   :  { %v249_v40 = vsel %vm247_vm8, %v248_v38, %v246_v39  ;;  %v545_v39 = vld [vmem:[%s776_s4] ss:$0 sm:$0xff] }
 0x2b9   :  { %v251_v41 = vadd.f32 1e-06, %v249_v40  ;;  %v561_v42 = vpop.eup %560 }
 0x2ba   :  { %v254_v44 = vmul.f32 %v561_v42, %v216_v3 }
 0x2bb   :  { %562 = vrcp.f32 %v251_v41 }
 0x2c1   :  { %v563_v43 = vpop.eup %562 }
 0x2c2   :  { %v255_v45 = vmul.f32 %v563_v43, %v217_v6 }
 0x2c4   :  { %v256_v46 = vpack.c.bf16 %v255_v45, %v254_v44 }
 0x2c6   :  { %330 = vmatmul.bf16.vlgmr.msra.gmra.mxu1 %v256_v46 }
 0x343   :  { %v331_v48 = vpop.f32.mrf.mxu1 }
 0x344   :  { %v336_v49 = vadd.f32 %v331_v48, %v740_v59 }
 0x346   :  { %v343_v50 = vadd.f32 %v543_v47, %v336_v49 }
 0x348   :  { %345 = vadd.xlane.f32.xlu2 %v343_v50 }
 0x34b   :  { %v333_v51 = vpop.f32.mrf.mxu1 }
 0x34c   :  { %v337_v52 = vadd.f32 %v333_v51, %v744_v62 }
 0x34e   :  { %v344_v53 = vadd.f32 %v543_v47, %v337_v52 }
 0x350   :  { %347 = vadd.xlane.f32.xlu0 %v344_v53 }
 0x3bb   :  { %v346_v54 = vpop.xlane.xlu2 %345 }
 0x3bc   :  { %v349_v55 = vmul.f32 %v346_v54, %v733_v8 }
 0x3be   :  { %v351_v56 = vsub.f32 %v343_v50, %v349_v55 }
 0x3c0   :  { %v353_v57 = vmul.f32 %v351_v56, %v351_v56 }
 0x3c2   :  { %355 = vadd.xlane.f32.xlu1 %v353_v57 }
 0x3c3   :  { %v348_v58 = vpop.xlane.xlu0 %347 }
 0x3c4   :  { %v350_v60 = vmul.f32 %v348_v58, %v733_v8 }
 0x3c6   :  { %v755_v61 = vsub.f32 %v344_v53, %v350_v60 }
 0x3c8   :  { %v354_v59 = vmul.f32 %v755_v61, %v755_v61 }
 0x3ca   :  { %357 = vadd.xlane.f32.xlu2 %v354_v59 }
 0x435   :  { %v356_v63 = vpop.xlane.xlu1 %355 }
 0x436   :  { %v359_v2 = vmul.f32 0.007874016, %v356_v63 }
 0x438   :  { %564 = vrsqrt.f32 %v359_v2  ;;  %vm368_vm9 = vcmp.eq.f32.partialorder %v359_v2, inf  ;;  %v371_v12 = vand.u32 2147483648, %v359_v2  ;;  %vm370_vm10 = vcmp.eq.f32.partialorder %v359_v2, 0.0 }
 0x43d   :  { %v358_v62 = vpop.xlane.xlu2 %357 }
 0x43e   :  { %v565_v3 = vpop.eup %564  ;;  %v360_v4 = vmul.f32 0.007874016, %v358_v62 }
 0x43f   :  { %v362_v5 = vmul.f32 %v565_v3, %v359_v2 }
 0x440   :  { %566 = vrsqrt.f32 %v360_v4  ;;  %vm380_vm11 = vcmp.eq.f32.partialorder %v360_v4, inf  ;;  %v383_v20 = vand.u32 2147483648, %v360_v4  ;;  %vm382_vm12 = vcmp.eq.f32.partialorder %v360_v4, 0.0 }
 0x441   :  { %v363_v0 = vmul.f32 %v565_v3, %v362_v5 }
 0x443   :  { %v364_v6 = vmul.f32 0.5, %v363_v0 }
 0x445   :  { %v365_v7 = vsub.f32 1.5, %v364_v6 }
 0x446   :  { %v567_v9 = vpop.eup %566 }
 0x447   :  { %v366_v1 = vmul.f32 %v565_v3, %v365_v7  ;;  %v374_v8 = vmul.f32 %v567_v9, %v360_v4 }
 0x449   :  { %v367_v10 = vmul.f32 %v366_v1, %v359_v2  ;;  %v375_v11 = vmul.f32 %v567_v9, %v374_v8 }
 0x44b   :  { %v369_v13 = vsel %vm368_vm9, %v359_v2, %v367_v10  ;;  %v376_v14 = vmul.f32 0.5, %v375_v11 }
 0x44c   :  { %v372_v15 = vsel %vm370_vm10, %v371_v12, %v369_v13 }
 0x44d   :  { %v386_v16 = vadd.f32 1e-06, %v372_v15  ;;  %v377_v17 = vsub.f32 1.5, %v376_v14 }
 0x44f   :  { %568 = vrcp.f32 %v386_v16  ;;  %v378_v18 = vmul.f32 %v567_v9, %v377_v17  ;;  %v399_v27 = vand.u32 2147483648, %v386_v16  ;;  %v397_v29 = vand.u32 2147483647, %v386_v16 }
 0x450   :  { %vm393_vm14 = vweird.f32 %v386_v16 }
 0x451   :  { %v379_v19 = vmul.f32 %v378_v18, %v360_v4  ;;  %v400_v32 = vor.u32 1.1754944e-38, %v399_v27  ;;  %vm398_vm0 = vcmp.eq.f32.partialorder %v397_v29, 8.507059e+37 }
 0x453   :  { %v381_v21 = vsel %vm380_vm11, %v360_v4, %v379_v19 }
 0x454   :  { %v384_v22 = vsel %vm382_vm12, %v383_v20, %v381_v21 }
 0x455   :  { %v569_v23 = vpop.eup %568  ;;  %v387_v24 = vadd.f32 1e-06, %v384_v22 }
 0x456   :  { %v389_v25 = vmul.f32 %v569_v23, %v386_v16  ;;  %vm394_vm13 = vweird.f32 %v569_v23 }
 0x457   :  { %570 = vrcp.f32 %v387_v24  ;;  %vm395_vm15 = vmor %vm393_vm14, %vm394_vm13  ;;  %v414_v40 = vand.u32 2147483648, %v387_v24  ;;  %v412_v42 = vand.u32 2147483647, %v387_v24  ;;  %vm408_vm2 = vweird.f32 %v387_v24 }
 0x458   :  { %v390_v26 = vsub.f32 1.0, %v389_v25 }
 0x459   :  { %v415_v46 = vor.u32 1.1754944e-38, %v414_v40  ;;  %vm413_vm4 = vcmp.eq.f32.partialorder %v412_v42, 8.507059e+37 }
 0x45a   :  { %v391_v28 = vmul.f32 %v569_v23, %v390_v26 }
 0x45c   :  { %v392_v30 = vadd.f32 %v569_v23, %v391_v28 }
 0x45d   :  { %v571_v31 = vpop.eup %570 }
 0x45e   :  { %v396_v33 = vsel %vm395_vm15, %v569_v23, %v392_v30  ;;  %v404_v34 = vmul.f32 %v571_v31, %v387_v24  ;;  %vm409_vm1 = vweird.f32 %v571_v31 }
 0x45f   :  { %v401_v36 = vsel %vm398_vm0, %v400_v32, %v396_v33  ;;  %vm410_vm3 = vmor %vm408_vm2, %vm409_vm1 }
 0x460   :  { %v402_v37 = vmul.f32 %v401_v36, %v351_v56  ;;  %v405_v38 = vsub.f32 1.0, %v404_v34 }
 0x462   :  { %v406_v41 = vmul.f32 %v571_v31, %v405_v38  ;;  %v421_v43 = vmul.f32 %v544_v35, %v402_v37 }
 0x464   :  { %v407_v44 = vadd.f32 %v571_v31, %v406_v41  ;;  %v427_v45 = vadd.f32 %v545_v39, %v421_v43 }
 0x466   :  { %v411_v47 = vsel %vm410_vm3, %v571_v31, %v407_v44  ;;  %429 = vst [vmem:[#allocation8] sm:$0xff] %v427_v45 }
 0x467   :  { %v416_v48 = vsel %vm413_vm4, %v415_v46, %v411_v47 }
 0x468   :  { %v417_v49 = vmul.f32 %v416_v48, %v755_v61 }
 0x46a   :  { %v422_v50 = vmul.f32 %v544_v35, %v417_v49 }
 0x46c   :  { %v428_v51 = vadd.f32 %v545_v39, %v422_v50 }
 0x46e   :  { %430 = vst [vmem:[#allocation8 + $0x8] sm:$0xff] %v428_v51 }
 0x46f   :  { %443 = dma.vmem_to_hbm [thread:$0]  %s436_s15, 256, %s438_s17, [#allocation4], %s678_s30, %s678_s30, %s679_s6  }
 0x470   :  { %672 = dma.done.wait [#allocation4], 256  }
 0x471   :  { %673 = vsyncadd [#allocation4], 4294967040 }
 0x472   :  { %448 = vsyncpa [#allocation3], 1 }
 0x473   :  { %449 = vsyncpa [#allocation6], 1 }
 0x474   :  { %450 = vsyncpa [#allocation4], 1 }

</bundles_post_ra>
